<compile_context>
chip_gen: v6e
topology: v6e:2x2x1
jax: 0.10.0
libtpu: 0.0.40
codegen_flags: <defaults>
</compile_context>

<pallas_src>
import functools

import jax
import jax.numpy as jnp
from jax import lax
from jax.experimental import pallas as pl
from jax.experimental.pallas import tpu as pltpu

BN_EPS = 1e-5


# ----------------------------------------------------------------------------
# Kernel 1: 7x7/s2 conv for one (image, H-tile) as a single K=49*Cin bf16 matmul,
# plus per-tile centred BN partial sums.
#   xw_ref:   (1, 1, 2, (ho_t+3)*rb, 7*Cin) bf16   dim 2 = conv-row parity; rows ordered
#                                                   (h_pair, w_parity, w_pair)
#   w_ref:    (49*Cin, Cout)                 bf16   taps ordered (kh, kw, cin)
#   conv_ref: (1, m_t, Cout)                 bf16   rows ordered (ho, w_parity, w_pair)
#   stats_ref:(1, 1, 2, Cout)                f32    [sum, centred sum of squares]
#   slab_ref: (m_t, 49*Cin)                  bf16   scratch: all 49 taps per output row
# ----------------------------------------------------------------------------
def _conv_stats_kernel(xw_ref, w_ref, conv_ref, stats_ref, slab_ref, *, row_block):
    m_t = conv_ref.shape[1]
    k7 = xw_ref.shape[4]
    # Assemble the K = 49*Cin LHS once: the 7 kh taps are row-shifted views of the same array.
    for kh in range(7):                                   # static unroll
        h_par, h_off = kh % 2, kh // 2
        slab_ref[:, kh * k7:(kh + 1) * k7] = (
            xw_ref[0, 0, h_par, pl.ds(h_off * row_block, m_t), :])
    # Single MXU pass (f32 accumulation), stats from the hot accumulator, single bf16 store.
    acc = jnp.dot(slab_ref[...], w_ref[...], preferred_element_type=jnp.float32)
    s1 = jnp.sum(acc, axis=0, keepdims=True)              # (1, Cout)
    d = acc - s1 * (1.0 / m_t)                            # centre with the per-tile mean
    ss = jnp.sum(d * d, axis=0, keepdims=True)
    stats_ref[0, 0] = jnp.concatenate([s1, ss], axis=0)
    conv_ref[0] = acc.astype(conv_ref.dtype)


# ----------------------------------------------------------------------------
# Kernel 2: fused BN-apply + ReLU + 3x3/s2 max pool in a W-folded lane-dense layout.
#   y_ref:  (1, hp, 4, wp*Cout) bf16   dim 2 = h_parity*2 + w_parity of the conv output
#   sc_ref, sh_ref: (1, wp*Cout) f32   BN scale / shift tiled along wp (index = j*Cout + c)
#   o_ref:  (1, hp, wp*Cout)    f32
# ----------------------------------------------------------------------------
def _bn_relu_pool_kernel(y_ref, sc_ref, sh_ref, o_ref, *, cout):
    hp, wpc = o_ref.shape[1], o_ref.shape[2]
    sc = sc_ref[...]
    sh = sh_ref[...]

    def act(v):                                           # BN affine + ReLU, f32
        return jnp.maximum(v.astype(jnp.float32) * sc + sh, 0.0)

    a00 = act(y_ref[0, :, 0, :])                          # conv rows 2i,   cols 2j
    a01 = act(y_ref[0, :, 1, :])                          # conv rows 2i,   cols 2j+1
    a10 = act(y_ref[0, :, 2, :])                          # conv rows 2i+1, cols 2j
    a11 = act(y_ref[0, :, 3, :])                          # conv rows 2i+1, cols 2j+1

    # Post-ReLU values are >= 0, so 0 stands in for the -inf pool padding.
    zero = jnp.zeros_like(a00)
    lane = lax.broadcasted_iota(jnp.int32, (hp, wpc), 1)
    has_left = lane >= cout                               # pooled col j has a conv col 2j-1
    # Conv col 2j-1 = col 2(j-1)+1: the odd-parity plane shifted one Cout lane-block right.
    left0 = jnp.where(has_left, pltpu.roll(a01, shift=cout, axis=1), zero)
    left1 = jnp.where(has_left, pltpu.roll(a11, shift=cout, axis=1), zero)
    m0 = jnp.maximum(jnp.maximum(a00, a01), left0)        # conv row 2i   over the W window
    m1 = jnp.maximum(jnp.maximum(a10, a11), left1)        # conv row 2i+1 over the W window
    # H window {2i-1, 2i, 2i+1}: conv row 2i-1 is m1 of pooled row i-1.
    # TODO(synk): switch this single sublane shift to pltpu.roll(axis=0) once verified on all gens.
    up = jnp.concatenate([zero[:1], m1[:hp - 1]], axis=0)
    o_ref[0] = jnp.maximum(jnp.maximum(m0, m1), up)


def _pick_num_h_tiles(ho, rb):
    """Tile count along conv-output H: ~2048 rows per tile, >=2 tiles when cheap, and keep the
    bf16 output block's sublane count a multiple of 16."""
    start = max(2, -(-(ho * rb) // 2048))
    for n in range(start, ho + 1):
        if ho % n == 0 and ((ho // n) * rb) % 16 == 0:
            return n
    return 1


# ----------------------------------------------------------------------------
# Wrapper
# ----------------------------------------------------------------------------
@jax.jit
def init_unit_large(x_nchw, conv_w, gamma, beta):
    """x_nchw: (N, Cin, H, W) f32; conv_w: (Cout, Cin, 7, 7); gamma/beta: (Cout,)."""
    N, Cin, H, W = x_nchw.shape
    Cout = conv_w.shape[0]

    # Conv geometry (k=7, s=2, p=3) and pool geometry (k=3, s=2, p=1).
    ho = (H + 2 * 3 - 7) // 2 + 1
    wo = (W + 2 * 3 - 7) // 2 + 1
    if ho % 2 or wo % 2:
        # TODO(synk): odd conv-output sizes need a masked tail for the parity-split pool.
        raise NotImplementedError("conv output H/W must be even for this kernel")
    hp, wp = ho // 2, wo // 2

    hpad, wpad = 2 * ho + 6, 2 * wo + 6
    hq = hpad // 2                                   # = ho + 3 h-pairs
    rb = 2 * wp                                      # rows per h-pair (= wo)
    k7 = 7 * Cin
    m_img = ho * wo

    n_ht = _pick_num_h_tiles(ho, rb)
    ho_t = ho // n_ht
    m_t = ho_t * rb

    # NCHW -> NHWC, cast to bf16 BEFORE any tap gathering, zero-pad (conv padding = 3).
    x = jnp.transpose(x_nchw, (0, 2, 3, 1)).astype(jnp.bfloat16)
    xpad = jnp.pad(x, ((0, 0), (3, hpad - 3 - H), (3, wpad - 3 - W), (0, 0)))

    # H-parity split: xh[n, h_par, q, w, c] = xpad[n, 2q + h_par, w, c]
    xh = xpad.reshape(N, hq, 2, wpad, Cin).transpose(0, 2, 1, 3, 4)

    # W-direction tap gather (bf16, ~(7/4)x raw input instead of the 49/4x full im2col):
    #   wtap6[n, h_par, q, w_par, j, kw*Cin + c] = xpad[n, 2q + h_par, 4j + 2*w_par + kw, c]
    per_parity = []
    for w_par in range(2):
        cols = [xh[:, :, :, 2 * w_par + kw: 2 * w_par + kw + 4 * (wp - 1) + 1: 4, :]
                for kw in range(7)]
        per_parity.append(jnp.concatenate(cols, axis=-1))           # (N, 2, hq, wp, 7*Cin)
    wtap6 = jnp.stack(per_parity, axis=3)                            # (N, 2, hq, 2, wp, 7*Cin)

    # H-tile the taps with the 3-h-pair conv halo duplicated so Pallas blocks never overlap.
    tiles = [wtap6[:, :, t * ho_t: t * ho_t + ho_t + 3] for t in range(n_ht)]
    wtap = jnp.stack(tiles, axis=1)                   # (N, n_ht, 2, ho_t+3, 2, wp, 7*Cin)
    wtap = wtap.reshape(N, n_ht, 2, (ho_t + 3) * rb, k7)

    # Weights: (Cout, Cin, 7, 7) -> (kh*kw*Cin, Cout), matching the slab's tap order.
    wmat = jnp.transpose(conv_w, (2, 3, 1, 0)).reshape(49 * Cin, Cout).astype(jnp.bfloat16)

    conv_flops = 2 * N * m_img * 49 * Cin * Cout
    conv_bytes = (wtap.size * 2 + wmat.size * 2
                  + N * m_img * Cout * 2 + N * n_ht * 2 * Cout * 4)
    blk1 = (2 * (2 * (ho_t + 3) * rb * k7 * 2 + 49 * Cin * Cout * 2
                 + m_t * Cout * 2 + 2 * Cout * 4)
            + m_t * 49 * Cin * 2 + m_t * Cout * 4)
    vmem1 = int(min(32 * 2 ** 20, max(8 * 2 ** 20, 4 * blk1)))

    conv, stats = pl.pallas_call(
        functools.partial(_conv_stats_kernel, row_block=rb),
        grid=(N, n_ht),
        in_specs=[
            pl.BlockSpec((1, 1, 2, (ho_t + 3) * rb, k7), lambda n, t: (n, t, 0, 0, 0)),
            pl.BlockSpec((49 * Cin, Cout), lambda n, t: (0, 0)),
        ],
        out_specs=(
            pl.BlockSpec((1, m_t, Cout), lambda n, t: (n, t, 0)),
            pl.BlockSpec((1, 1, 2, Cout), lambda n, t: (n, t, 0, 0)),
        ),
        out_shape=(
            jax.ShapeDtypeStruct((N, m_img, Cout), jnp.bfloat16),
            jax.ShapeDtypeStruct((N, n_ht, 2, Cout), jnp.float32),
        ),
        scratch_shapes=[pltpu.VMEM((m_t, 49 * Cin), jnp.bfloat16)],
        compiler_params=pltpu.CompilerParams(
            dimension_semantics=("parallel", "parallel"),
            vmem_limit_bytes=vmem1,
        ),
        cost_estimate=pl.CostEstimate(
            flops=conv_flops, transcendentals=0, bytes_accessed=conv_bytes),
    )(wtap, wmat)

    # Combine per-tile centred statistics with the parallel-variance formula and fold BN into
    # a single scale/shift (f32, var clamped >= 0).
    m_total = float(N * m_img)
    s1 = stats[:, :, 0, :]                            # (N, n_ht, Cout)
    ss = stats[:, :, 1, :]
    mean = jnp.sum(s1, axis=(0, 1)) / m_total
    mean_t = s1 / float(m_t)
    var = (jnp.sum(ss, axis=(0, 1))
           + float(m_t) * jnp.sum((mean_t - mean) ** 2, axis=(0, 1))) / m_total
    var = jnp.maximum(var, 0.0)
    scale = gamma.astype(jnp.float32) * lax.rsqrt(var + BN_EPS)
    shift = beta.astype(jnp.float32) - mean * scale
    wpc = wp * Cout
    sc_w = jnp.tile(scale, wp).reshape(1, wpc)        # W-folded lane layout: index = j*Cout + c
    sh_w = jnp.tile(shift, wp).reshape(1, wpc)

    # Free row-major reinterpretation: rows (ho, w_par, j) x Cout -> (hp, h_par*2+w_par, j*Cout+c).
    y = conv.reshape(N, hp, 4, wpc)

    pool_bytes = y.size * 2 + 2 * wpc * 4 + N * hp * wpc * 4
    blk2 = 2 * (hp * 4 * wpc * 2 + 2 * wpc * 4 + hp * wpc * 4)
    vmem2 = int(min(32 * 2 ** 20, max(8 * 2 ** 20, 4 * blk2)))

    pooled = pl.pallas_call(
        functools.partial(_bn_relu_pool_kernel, cout=Cout),
        grid=(N,),
        in_specs=[
            pl.BlockSpec((1, hp, 4, wpc), lambda n: (n, 0, 0, 0)),
            pl.BlockSpec((1, wpc), lambda n: (0, 0)),
            pl.BlockSpec((1, wpc), lambda n: (0, 0)),
        ],
        out_specs=pl.BlockSpec((1, hp, wpc), lambda n: (n, 0, 0)),
        out_shape=jax.ShapeDtypeStruct((N, hp, wpc), jnp.float32),
        compiler_params=pltpu.CompilerParams(
            dimension_semantics=("parallel",),
            vmem_limit_bytes=vmem2,
        ),
        cost_estimate=pl.CostEstimate(
            flops=14 * N * hp * wpc, transcendentals=0, bytes_accessed=pool_bytes),
    )(y, sc_w, sh_w)

    out = pooled.reshape(N, hp, wp, Cout)
    return jnp.transpose(out, (0, 3, 1, 2))           # NHWC -> NCHW


# ----------------------------------------------------------------------------
# Pure-JAX reference.  Conv operands and the conv intermediate are rounded to bf16 (matching
# the kernel's bf16 MXU matmul and bf16 intermediate); BN stats come from the f32 conv, as in
# the kernel.  Everything else is f32.
# ----------------------------------------------------------------------------
def reference_forward(x_nchw, conv_w, gamma, beta):
    xb = x_nchw.astype(jnp.bfloat16).astype(jnp.float32)
    wb = conv_w.astype(jnp.bfloat16).astype(jnp.float32)
    conv = lax.conv_general_dilated(
        xb, wb, window_strides=(2, 2), padding=((3, 3), (3, 3)),
        dimension_numbers=("NCHW", "OIHW", "NCHW"))
    mean = conv.mean(axis=(0, 2, 3), keepdims=True)
    var = ((conv - mean) ** 2).mean(axis=(0, 2, 3), keepdims=True)
    convq = conv.astype(jnp.bfloat16).astype(jnp.float32)
    y = (convq - mean) * lax.rsqrt(var + BN_EPS)
    y = y * gamma.reshape(1, -1, 1, 1) + beta.reshape(1, -1, 1, 1)
    y = jnp.maximum(y, 0.0)
    return lax.reduce_window(
        y, -jnp.inf, lax.max,
        window_dimensions=(1, 1, 3, 3), window_strides=(1, 1, 2, 2),
        padding=((0, 0), (0, 0), (1, 1), (1, 1)))


if __name__ == "__main__":
    # Small deterministic setup consistent with the module: in_channels=4, out_channels=8.
    N, Cin, H, W = 2, 4, 16, 16
    Cout = 8

    key = jax.random.PRNGKey(0)
    kx, kw = jax.random.split(key)
    x = jax.random.normal(kx, (N, Cin, H, W), dtype=jnp.float32)
    conv_w = 0.1 * jax.random.normal(kw, (Cout, Cin, 7, 7), dtype=jnp.float32)
    gamma = jnp.ones((Cout,), jnp.float32)      # BN affine defaults
    beta = jnp.zeros((Cout,), jnp.float32)

    out = init_unit_large(x, conv_w, gamma, beta)
    out = jax.block_until_ready(out)

    ref = reference_forward(x, conv_w, gamma, beta)
    assert out.shape == (N, Cout, 4, 4), out.shape
    max_err = float(jnp.max(jnp.abs(out - ref)))
    assert jnp.allclose(out, ref, rtol=5e-3, atol=5e-3), max_err

    print("KERNEL_OK")
</pallas_src>

<mosaic_0001>
module attributes {stable_mosaic.version = 11 : i64} {
  func.func @_conv_stats_kernel(%arg0: i32, %arg1: i32, %arg2: memref<1x1x2x56x28xbf16, #tpu.memory_space<vmem>>, %arg3: memref<196x8xbf16, #tpu.memory_space<vmem>>, %arg4: memref<1x32x8xbf16, #tpu.memory_space<vmem>>, %arg5: memref<1x1x2x8xf32, #tpu.memory_space<vmem>>, %arg6: memref<32x196xbf16, #tpu.memory_space<vmem>>) attributes {dimension_semantics = [#tpu.dimension_semantics<parallel>, #tpu.dimension_semantics<parallel>], iteration_bounds = array<i64: 2, 2>, scalar_prefetch = 0 : i64, scratch_operands = 1 : i64, tpu.core_type = #tpu.core_type<tc>, window_params = [{transform_indices = @transform_0, window_bounds = array<i64: 1, 1, 2, 56, 28>}, {pipeline_mode = #tpu.pipeline_mode<synchronous>, transform_indices = @transform_1, window_bounds = array<i64: 196, 8>}, {transform_indices = @transform_2, window_bounds = array<i64: 1, 32, 8>}, {transform_indices = @transform_3, window_bounds = array<i64: 1, 1, 2, 8>}]} {
    %c0 = arith.constant 0 : index
    %c0_0 = arith.constant 0 : index
    %c0_1 = arith.constant 0 : index
    %c0_2 = arith.constant 0 : index
    %c0_3 = arith.constant 0 : index
    %0 = vector.load %arg2[%c0, %c0_0, %c0_1, %c0_2, %c0_3] : memref<1x1x2x56x28xbf16, #tpu.memory_space<vmem>>, vector<1x1x1x32x28xbf16>
    %1 = vector.shape_cast %0 : vector<1x1x1x32x28xbf16> to vector<32x28xbf16>
    %c0_4 = arith.constant 0 : index
    %c0_5 = arith.constant 0 : index
    %2 = vector.load %arg6[%c0_4, %c0_5] : memref<32x196xbf16, #tpu.memory_space<vmem>>, vector<32x28xbf16>
    tpu.vector_store %arg6[%c0_4, %c0_5], %1 {strides = array<i32>} : memref<32x196xbf16, #tpu.memory_space<vmem>>, vector<32x28xbf16>,
    %c0_6 = arith.constant 0 : index
    %c0_7 = arith.constant 0 : index
    %c1 = arith.constant 1 : index
    %c0_8 = arith.constant 0 : index
    %c0_9 = arith.constant 0 : index
    %3 = vector.load %arg2[%c0_6, %c0_7, %c1, %c0_8, %c0_9] : memref<1x1x2x56x28xbf16, #tpu.memory_space<vmem>>, vector<1x1x1x32x28xbf16>
    %4 = vector.shape_cast %3 : vector<1x1x1x32x28xbf16> to vector<32x28xbf16>
    %c0_10 = arith.constant 0 : index
    %c28 = arith.constant 28 : index
    %5 = vector.load %arg6[%c0_10, %c28] : memref<32x196xbf16, #tpu.memory_space<vmem>>, vector<32x28xbf16>
    tpu.vector_store %arg6[%c0_10, %c28], %4 {strides = array<i32>} : memref<32x196xbf16, #tpu.memory_space<vmem>>, vector<32x28xbf16>,
    %c0_11 = arith.constant 0 : index
    %c0_12 = arith.constant 0 : index
    %c0_13 = arith.constant 0 : index
    %c8 = arith.constant 8 : index
    %c0_14 = arith.constant 0 : index
    %6 = vector.load %arg2[%c0_11, %c0_12, %c0_13, %c8, %c0_14] : memref<1x1x2x56x28xbf16, #tpu.memory_space<vmem>>, vector<1x1x1x32x28xbf16>
    %7 = vector.shape_cast %6 : vector<1x1x1x32x28xbf16> to vector<32x28xbf16>
    %c0_15 = arith.constant 0 : index
    %c56 = arith.constant 56 : index
    %8 = vector.load %arg6[%c0_15, %c56] : memref<32x196xbf16, #tpu.memory_space<vmem>>, vector<32x28xbf16>
    tpu.vector_store %arg6[%c0_15, %c56], %7 {strides = array<i32>} : memref<32x196xbf16, #tpu.memory_space<vmem>>, vector<32x28xbf16>,
    %c0_16 = arith.constant 0 : index
    %c0_17 = arith.constant 0 : index
    %c1_18 = arith.constant 1 : index
    %c8_19 = arith.constant 8 : index
    %c0_20 = arith.constant 0 : index
    %9 = vector.load %arg2[%c0_16, %c0_17, %c1_18, %c8_19, %c0_20] : memref<1x1x2x56x28xbf16, #tpu.memory_space<vmem>>, vector<1x1x1x32x28xbf16>
    %10 = vector.shape_cast %9 : vector<1x1x1x32x28xbf16> to vector<32x28xbf16>
    %c0_21 = arith.constant 0 : index
    %c84 = arith.constant 84 : index
    %11 = vector.load %arg6[%c0_21, %c84] : memref<32x196xbf16, #tpu.memory_space<vmem>>, vector<32x28xbf16>
    tpu.vector_store %arg6[%c0_21, %c84], %10 {strides = array<i32>} : memref<32x196xbf16, #tpu.memory_space<vmem>>, vector<32x28xbf16>,
    %c0_22 = arith.constant 0 : index
    %c0_23 = arith.constant 0 : index
    %c0_24 = arith.constant 0 : index
    %c16 = arith.constant 16 : index
    %c0_25 = arith.constant 0 : index
    %12 = vector.load %arg2[%c0_22, %c0_23, %c0_24, %c16, %c0_25] : memref<1x1x2x56x28xbf16, #tpu.memory_space<vmem>>, vector<1x1x1x32x28xbf16>
    %13 = vector.shape_cast %12 : vector<1x1x1x32x28xbf16> to vector<32x28xbf16>
    %c0_26 = arith.constant 0 : index
    %c112 = arith.constant 112 : index
    %14 = vector.load %arg6[%c0_26, %c112] : memref<32x196xbf16, #tpu.memory_space<vmem>>, vector<32x28xbf16>
    tpu.vector_store %arg6[%c0_26, %c112], %13 {strides = array<i32>} : memref<32x196xbf16, #tpu.memory_space<vmem>>, vector<32x28xbf16>,
    %c0_27 = arith.constant 0 : index
    %c0_28 = arith.constant 0 : index
    %c1_29 = arith.constant 1 : index
    %c16_30 = arith.constant 16 : index
    %c0_31 = arith.constant 0 : index
    %15 = vector.load %arg2[%c0_27, %c0_28, %c1_29, %c16_30, %c0_31] : memref<1x1x2x56x28xbf16, #tpu.memory_space<vmem>>, vector<1x1x1x32x28xbf16>
    %16 = vector.shape_cast %15 : vector<1x1x1x32x28xbf16> to vector<32x28xbf16>
    %c0_32 = arith.constant 0 : index
    %c140 = arith.constant 140 : index
    %17 = vector.load %arg6[%c0_32, %c140] : memref<32x196xbf16, #tpu.memory_space<vmem>>, vector<32x28xbf16>
    tpu.vector_store %arg6[%c0_32, %c140], %16 {strides = array<i32>} : memref<32x196xbf16, #tpu.memory_space<vmem>>, vector<32x28xbf16>,
    %c0_33 = arith.constant 0 : index
    %c0_34 = arith.constant 0 : index
    %c0_35 = arith.constant 0 : index
    %c24 = arith.constant 24 : index
    %c0_36 = arith.constant 0 : index
    %18 = vector.load %arg2[%c0_33, %c0_34, %c0_35, %c24, %c0_36] : memref<1x1x2x56x28xbf16, #tpu.memory_space<vmem>>, vector<1x1x1x32x28xbf16>
    %19 = vector.shape_cast %18 : vector<1x1x1x32x28xbf16> to vector<32x28xbf16>
    %c0_37 = arith.constant 0 : index
    %c168 = arith.constant 168 : index
    %20 = vector.load %arg6[%c0_37, %c168] : memref<32x196xbf16, #tpu.memory_space<vmem>>, vector<32x28xbf16>
    tpu.vector_store %arg6[%c0_37, %c168], %19 {strides = array<i32>} : memref<32x196xbf16, #tpu.memory_space<vmem>>, vector<32x28xbf16>,
    %c0_38 = arith.constant 0 : index
    %c0_39 = arith.constant 0 : index
    %21 = vector.load %arg6[%c0_38, %c0_39] : memref<32x196xbf16, #tpu.memory_space<vmem>>, vector<32x196xbf16>
    %c0_40 = arith.constant 0 : index
    %c0_41 = arith.constant 0 : index
    %22 = vector.load %arg3[%c0_40, %c0_41] : memref<196x8xbf16, #tpu.memory_space<vmem>>, vector<196x8xbf16>
    %cst = arith.constant dense<0.000000e+00> : vector<32x8xf32>
    %23 = tpu.matmul %21, %22, %cst {dimension_numbers = #tpu.dot_dimension_numbers<[1], [0], [0], [1], [0, 0, 1, 1], [], []>} : vector<32x196xbf16>, vector<196x8xbf16>, vector<32x8xf32> -> vector<32x8xf32>
    %cst_42 = arith.constant dense<0.000000e+00> : vector<8xf32>
    %24 = vector.multi_reduction <add>, %23, %cst_42 [0] : vector<32x8xf32> to vector<8xf32>
    %25 = vector.shape_cast %24 : vector<8xf32> to vector<1x8xf32>
    %cst_43 = arith.constant 3.125000e-02 : f32
    %26 = vector.broadcast %cst_43 : f32 to vector<1x8xf32>
    %27 = arith.mulf %25, %26 : vector<1x8xf32>
    %28 = vector.broadcast %27 : vector<1x8xf32> to vector<32x8xf32>
    %29 = arith.subf %23, %28 : vector<32x8xf32>
    %30 = arith.mulf %29, %29 : vector<32x8xf32>
    %cst_44 = arith.constant dense<0.000000e+00> : vector<8xf32>
    %31 = vector.multi_reduction <add>, %30, %cst_44 [0] : vector<32x8xf32> to vector<8xf32>
    %32 = vector.shape_cast %31 : vector<8xf32> to vector<1x8xf32>
    %33 = tpu.concatenate %25, %32 in 0 : vector<1x8xf32>, vector<1x8xf32> -> vector<2x8xf32>
    %c0_45 = arith.constant 0 : index
    %c0_46 = arith.constant 0 : index
    %c0_47 = arith.constant 0 : index
    %c0_48 = arith.constant 0 : index
    %34 = vector.load %arg5[%c0_45, %c0_46, %c0_47, %c0_48] : memref<1x1x2x8xf32, #tpu.memory_space<vmem>>, vector<1x1x2x8xf32>
    %35 = vector.shape_cast %34 : vector<1x1x2x8xf32> to vector<2x8xf32>
    %36 = vector.shape_cast %33 : vector<2x8xf32> to vector<1x1x2x8xf32>
    tpu.vector_store %arg5[%c0_45, %c0_46, %c0_47, %c0_48], %36 {strides = array<i32>} : memref<1x1x2x8xf32, #tpu.memory_space<vmem>>, vector<1x1x2x8xf32>,
    %37 = arith.truncf %23 : vector<32x8xf32> to vector<32x8xbf16>
    %c0_49 = arith.constant 0 : index
    %c0_50 = arith.constant 0 : index
    %c0_51 = arith.constant 0 : index
    %38 = vector.load %arg4[%c0_49, %c0_50, %c0_51] : memref<1x32x8xbf16, #tpu.memory_space<vmem>>, vector<1x32x8xbf16>
    %39 = vector.shape_cast %38 : vector<1x32x8xbf16> to vector<32x8xbf16>
    %40 = vector.shape_cast %37 : vector<32x8xbf16> to vector<1x32x8xbf16>
    tpu.vector_store %arg4[%c0_49, %c0_50, %c0_51], %40 {strides = array<i32>} : memref<1x32x8xbf16, #tpu.memory_space<vmem>>, vector<1x32x8xbf16>,
    return
  }
  func.func @transform_0(%arg0: i32, %arg1: i32) -> (i32, i32, i32, i32, i32) {
    %c0_i32 = arith.constant 0 : i32
    %c0_i32_0 = arith.constant 0 : i32
    %c0_i32_1 = arith.constant 0 : i32
    %c0_i32_2 = arith.constant 0 : i32
    return %arg0, %arg1, %c0_i32, %c0_i32_0, %c0_i32_1 : i32, i32, i32, i32, i32
  }
  func.func @transform_1(%arg0: i32, %arg1: i32) -> (i32, i32) {
    %c0_i32 = arith.constant 0 : i32
    %c0_i32_0 = arith.constant 0 : i32
    %c0_i32_1 = arith.constant 0 : i32
    return %c0_i32, %c0_i32_0 : i32, i32
  }
  func.func @transform_2(%arg0: i32, %arg1: i32) -> (i32, i32, i32) {
    %c0_i32 = arith.constant 0 : i32
    %c0_i32_0 = arith.constant 0 : i32
    return %arg0, %arg1, %c0_i32 : i32, i32, i32
  }
  func.func @transform_3(%arg0: i32, %arg1: i32) -> (i32, i32, i32, i32) {
    %c0_i32 = arith.constant 0 : i32
    %c0_i32_0 = arith.constant 0 : i32
    %c0_i32_1 = arith.constant 0 : i32
    return %arg0, %arg1, %c0_i32, %c0_i32_0 : i32, i32, i32, i32
  }
}

module attributes {stable_mosaic.version = 11 : i64} {
  func.func @_bn_relu_pool_kernel(%arg0: i32, %arg1: memref<1x4x4x32xbf16, #tpu.memory_space<vmem>>, %arg2: memref<1x32xf32, #tpu.memory_space<vmem>>, %arg3: memref<1x32xf32, #tpu.memory_space<vmem>>, %arg4: memref<1x4x32xf32, #tpu.memory_space<vmem>>) attributes {dimension_semantics = [#tpu.dimension_semantics<parallel>], iteration_bounds = array<i64: 2>, scalar_prefetch = 0 : i64, scratch_operands = 0 : i64, tpu.core_type = #tpu.core_type<tc>, window_params = [{transform_indices = @transform_0, window_bounds = array<i64: 1, 4, 4, 32>}, {pipeline_mode = #tpu.pipeline_mode<synchronous>, transform_indices = @transform_1, window_bounds = array<i64: 1, 32>}, {pipeline_mode = #tpu.pipeline_mode<synchronous>, transform_indices = @transform_2, window_bounds = array<i64: 1, 32>}, {transform_indices = @transform_3, window_bounds = array<i64: 1, 4, 32>}]} {
    %c0 = arith.constant 0 : index
    %c0_0 = arith.constant 0 : index
    %0 = vector.load %arg2[%c0, %c0_0] : memref<1x32xf32, #tpu.memory_space<vmem>>, vector<1x32xf32>
    %c0_1 = arith.constant 0 : index
    %c0_2 = arith.constant 0 : index
    %1 = vector.load %arg3[%c0_1, %c0_2] : memref<1x32xf32, #tpu.memory_space<vmem>>, vector<1x32xf32>
    %c0_3 = arith.constant 0 : index
    %c0_4 = arith.constant 0 : index
    %c0_5 = arith.constant 0 : index
    %c0_6 = arith.constant 0 : index
    %2 = vector.load %arg1[%c0_3, %c0_4, %c0_5, %c0_6] : memref<1x4x4x32xbf16, #tpu.memory_space<vmem>>, vector<1x4x1x32xbf16>
    %3 = vector.shape_cast %2 : vector<1x4x1x32xbf16> to vector<4x32xbf16>
    %4 = arith.extf %3 : vector<4x32xbf16> to vector<4x32xf32>
    %5 = vector.broadcast %0 : vector<1x32xf32> to vector<4x32xf32>
    %6 = arith.mulf %4, %5 : vector<4x32xf32>
    %7 = vector.broadcast %1 : vector<1x32xf32> to vector<4x32xf32>
    %8 = arith.addf %6, %7 : vector<4x32xf32>
    %cst = arith.constant 0.000000e+00 : f32
    %9 = vector.broadcast %cst : f32 to vector<4x32xf32>
    %10 = arith.maximumf %8, %9 : vector<4x32xf32>
    %c0_7 = arith.constant 0 : index
    %c0_8 = arith.constant 0 : index
    %c1 = arith.constant 1 : index
    %c0_9 = arith.constant 0 : index
    %11 = vector.load %arg1[%c0_7, %c0_8, %c1, %c0_9] : memref<1x4x4x32xbf16, #tpu.memory_space<vmem>>, vector<1x4x1x32xbf16>
    %12 = vector.shape_cast %11 : vector<1x4x1x32xbf16> to vector<4x32xbf16>
    %13 = arith.extf %12 : vector<4x32xbf16> to vector<4x32xf32>
    %14 = vector.broadcast %0 : vector<1x32xf32> to vector<4x32xf32>
    %15 = arith.mulf %13, %14 : vector<4x32xf32>
    %16 = vector.broadcast %1 : vector<1x32xf32> to vector<4x32xf32>
    %17 = arith.addf %15, %16 : vector<4x32xf32>
    %cst_10 = arith.constant 0.000000e+00 : f32
    %18 = vector.broadcast %cst_10 : f32 to vector<4x32xf32>
    %19 = arith.maximumf %17, %18 : vector<4x32xf32>
    %c0_11 = arith.constant 0 : index
    %c0_12 = arith.constant 0 : index
    %c2 = arith.constant 2 : index
    %c0_13 = arith.constant 0 : index
    %20 = vector.load %arg1[%c0_11, %c0_12, %c2, %c0_13] : memref<1x4x4x32xbf16, #tpu.memory_space<vmem>>, vector<1x4x1x32xbf16>
    %21 = vector.shape_cast %20 : vector<1x4x1x32xbf16> to vector<4x32xbf16>
    %22 = arith.extf %21 : vector<4x32xbf16> to vector<4x32xf32>
    %23 = vector.broadcast %0 : vector<1x32xf32> to vector<4x32xf32>
    %24 = arith.mulf %22, %23 : vector<4x32xf32>
    %25 = vector.broadcast %1 : vector<1x32xf32> to vector<4x32xf32>
    %26 = arith.addf %24, %25 : vector<4x32xf32>
    %cst_14 = arith.constant 0.000000e+00 : f32
    %27 = vector.broadcast %cst_14 : f32 to vector<4x32xf32>
    %28 = arith.maximumf %26, %27 : vector<4x32xf32>
    %c0_15 = arith.constant 0 : index
    %c0_16 = arith.constant 0 : index
    %c3 = arith.constant 3 : index
    %c0_17 = arith.constant 0 : index
    %29 = vector.load %arg1[%c0_15, %c0_16, %c3, %c0_17] : memref<1x4x4x32xbf16, #tpu.memory_space<vmem>>, vector<1x4x1x32xbf16>
    %30 = vector.shape_cast %29 : vector<1x4x1x32xbf16> to vector<4x32xbf16>
    %31 = arith.extf %30 : vector<4x32xbf16> to vector<4x32xf32>
    %32 = vector.broadcast %0 : vector<1x32xf32> to vector<4x32xf32>
    %33 = arith.mulf %31, %32 : vector<4x32xf32>
    %34 = vector.broadcast %1 : vector<1x32xf32> to vector<4x32xf32>
    %35 = arith.addf %33, %34 : vector<4x32xf32>
    %cst_18 = arith.constant 0.000000e+00 : f32
    %36 = vector.broadcast %cst_18 : f32 to vector<4x32xf32>
    %37 = arith.maximumf %35, %36 : vector<4x32xf32>
    %cst_19 = arith.constant 0.000000e+00 : f32
    %38 = vector.broadcast %cst_19 : f32 to vector<4x32xf32>
    %39 = tpu.iota {dimensions = array<i32: 1>} : vector<4x32xi32>
    %c8_i32 = arith.constant 8 : i32
    %40 = vector.broadcast %c8_i32 : i32 to vector<4x32xi32>
    %41 = arith.cmpi sge, %39, %40 : vector<4x32xi32>
    %c8_i32_20 = arith.constant 8 : i32
    %42 = tpu.dynamic_rotate %19 by %c8_i32_20 dim 1 : vector<4x32xf32>, i32 -> vector<4x32xf32>
    %43 = arith.select %41, %42, %38 : vector<4x32xi1>, vector<4x32xf32>
    %c8_i32_21 = arith.constant 8 : i32
    %44 = tpu.dynamic_rotate %37 by %c8_i32_21 dim 1 : vector<4x32xf32>, i32 -> vector<4x32xf32>
    %45 = arith.select %41, %44, %38 : vector<4x32xi1>, vector<4x32xf32>
    %46 = arith.maximumf %10, %19 : vector<4x32xf32>
    %47 = arith.maximumf %46, %43 : vector<4x32xf32>
    %48 = arith.maximumf %28, %37 : vector<4x32xf32>
    %49 = arith.maximumf %48, %45 : vector<4x32xf32>
    %50 = vector.extract_strided_slice %38 {offsets = [0, 0], sizes = [1, 32], strides = [1, 1]} : vector<4x32xf32> to vector<1x32xf32>
    %51 = vector.extract_strided_slice %49 {offsets = [0, 0], sizes = [3, 32], strides = [1, 1]} : vector<4x32xf32> to vector<3x32xf32>
    %52 = tpu.concatenate %50, %51 in 0 : vector<1x32xf32>, vector<3x32xf32> -> vector<4x32xf32>
    %53 = arith.maximumf %47, %49 : vector<4x32xf32>
    %54 = arith.maximumf %53, %52 : vector<4x32xf32>
    %c0_22 = arith.constant 0 : index
    %c0_23 = arith.constant 0 : index
    %c0_24 = arith.constant 0 : index
    %55 = vector.load %arg4[%c0_22, %c0_23, %c0_24] : memref<1x4x32xf32, #tpu.memory_space<vmem>>, vector<1x4x32xf32>
    %56 = vector.shape_cast %55 : vector<1x4x32xf32> to vector<4x32xf32>
    %57 = vector.shape_cast %54 : vector<4x32xf32> to vector<1x4x32xf32>
    tpu.vector_store %arg4[%c0_22, %c0_23, %c0_24], %57 {strides = array<i32>} : memref<1x4x32xf32, #tpu.memory_space<vmem>>, vector<1x4x32xf32>,
    return
  }
  func.func @transform_0(%arg0: i32) -> (i32, i32, i32, i32) {
    %c0_i32 = arith.constant 0 : i32
    %c0_i32_0 = arith.constant 0 : i32
    %c0_i32_1 = arith.constant 0 : i32
    %c0_i32_2 = arith.constant 0 : i32
    return %arg0, %c0_i32, %c0_i32_0, %c0_i32_1 : i32, i32, i32, i32
  }
  func.func @transform_1(%arg0: i32) -> (i32, i32) {
    %c0_i32 = arith.constant 0 : i32
    %c0_i32_0 = arith.constant 0 : i32
    %c0_i32_1 = arith.constant 0 : i32
    return %c0_i32, %c0_i32_0 : i32, i32
  }
  func.func @transform_2(%arg0: i32) -> (i32, i32) {
    %c0_i32 = arith.constant 0 : i32
    %c0_i32_0 = arith.constant 0 : i32
    %c0_i32_1 = arith.constant 0 : i32
    return %c0_i32, %c0_i32_0 : i32, i32
  }
  func.func @transform_3(%arg0: i32) -> (i32, i32, i32) {
    %c0_i32 = arith.constant 0 : i32
    %c0_i32_0 = arith.constant 0 : i32
    %c0_i32_1 = arith.constant 0 : i32
    return %arg0, %c0_i32, %c0_i32_0 : i32, i32, i32
  }
}

</mosaic_0001>

<bundles_post_ra>
// kernel: tile.18
= control target key start
LH: loop header
LB: loop body
LE: loop exit
PB: predicated region body
PF: predicated region fallthrough
CT: control target
= control target key end

     0   :  { %s22_s0 = inlined_call_operand.vmem [shape: f32[8], index: 0, kind: input, shape index: {}]   ;;  %s23_s1 = inlined_call_operand.vmem [shape: f32[4,8], index: 1, kind: output, shape index: {}]  }
   0x1   :  { %v4_v0 = vld [vmem:[%s22_s0] ss:$0 sm:$0xff] }
   0x2   :  { %5 = vst [vmem:[%s23_s1] sm:$0xf] %v4_v0 }

// kernel: tile.19
= control target key start
LH: loop header
LB: loop body
LE: loop exit
PB: predicated region body
PF: predicated region fallthrough
CT: control target
= control target key end

     0   :  { %vm8_vm0 = vcmask 64512   ;;  %s40_s8 = smov 8   ;;  %s41_s9 = smov 16   ;;  %vm14_vm1 = vcmask 261312   ;;  %vm20_vm2 = vcmask 195712   ;;  %vm26_vm3 = vcmask 130112   ;;  %s58_s0 = inlined_call_operand.vmem [shape: f32[4,8], index: 0, kind: input, shape index: {}]   ;;  %s59_s1 = inlined_call_operand.vmem [shape: f32[1,32], index: 1, kind: output, shape index: {}]  }
   0x1   :  { %v5_v0 = vld [vmem:[%s58_s0] sm:$0xf]  ;;  %s39_s0 = smov 24  }
   0x2   :  { %6 = vst [vmem:[#allocation1] sm:$0xf] %v5_v0 }
   0x9   :  { %v11_v1 = vld [vmem:[#allocation1 + $0x3] sm:$0x1]   ;;  %v23_v2 = vld [vmem:[#allocation1 + $0x1] sm:$0x1]   ;;  %v7_v3 = vld [vmem:[#allocation1] sm:$0x1]  }
   0xa   :  { %12 = vrot.lane.b32.xlu0 %v11_v1, %s39_s0  ;;  %24 = vrot.lane.b32.xlu1 %v23_v2, %s40_s8  ;;  %v17_v4 = vld [vmem:[#allocation1 + $0x2] sm:$0x1]   ;;  %9 = vst.msk [vmem:[#allocation0] sm:$0x1] %vm8_vm0, %v7_v3  }
   0xe   :  { %18 = vrot.lane.b32.xlu0 %v17_v4, %s41_s9 }
  0x7c   :  { %v13_v5 = vpop.permute.xlu0 %12   ;;  %v25_v6 = vpop.permute.xlu1 %24  }
  0x7d   :  { %15 = vst.msk [vmem:[#allocation0] sm:$0x1] %vm14_vm1, %v13_v5  }
  0x80   :  { %v19_v7 = vpop.permute.xlu0 %18  }
  0x81   :  { %21 = vst.msk [vmem:[#allocation0] sm:$0x1] %vm20_vm2, %v19_v7  }
  0x82   :  { %27 = vst.msk [vmem:[#allocation0] sm:$0x1] %vm26_vm3, %v25_v6  }
  0x89   :  { %v32_v8 = vld [vmem:[#allocation0] sm:$0x1] }
  0x8a   :  { %35 = vst [vmem:[%s59_s1] sm:$0x1] %v32_v8 }

// kernel: init_unit_large.2
= control target key start
LH: loop header
LB: loop body
LE: loop exit
PB: predicated region body
PF: predicated region fallthrough
CT: control target
= control target key end

     0   :  { %s997_s12 = smov 0   ;;  %s999_s13 = smov 0   ;;  %s1232_s0 = inlined_call_operand.vmem [shape: bf16[2,2,2,56,28], index: 0, kind: input, shape index: {}]   ;;  %s1233_s1 = inlined_call_operand.vmem [shape: bf16[196,8], index: 1, kind: input, shape index: {}]   ;;  %s1234_s2 = inlined_call_operand.vmem [shape: bf16[2,64,8], index: 2, kind: output, shape index: {0}]   ;;  %s1235_s3 = inlined_call_operand.vmem [shape: f32[2,2,2,8], index: 3, kind: output, shape index: {1}]  }
   0x1   :  { %s1001_s14 = smov 0   ;;  %s1003_s15 = smov 0  }
   0x2   :  { %s1005_s16 = smov 0  }
   0x3 LB: > { %s23_s17 = sadd.s32 1, %s960_s14  ;;  %s26_s18 = sadd.s32 1, %s964_s15  ;;  %s968_s16 = sphi %s1005_s16, %s14_s16   ;;  %s964_s15 = sphi %s1003_s15, %s1241_s15   ;;  %s960_s14 = sphi %s1001_s14, %s1240_s14   ;;  %s956_s13 = sphi %s999_s13, %s1239_s13   ;;  %s952_s12 = sphi %s997_s12, %s1238_s12  }
   0x4   : > { %p24_p0 = scmp.ge.s32.totalorder %s23_s17, 2  ;;  %p788_p1 = scmp.ge.s32.totalorder %s968_s16, 1 }
   0x5   : > { %p162_p2 = scmp.lt.s32.totalorder %s968_s16, 5 }
   0x6   : > { %s1243_s17 = smov (%p24_p0, %s23_s17), 0  ;;  %s1245_s18 = smov (!%p24_p0, %s26_s18), %s964_s15 }
   0x7   : > { %p163_p3 = pnand %p788_p1, %p162_p2  ;;  %p28_p4 = scmp.ge.s32.totalorder %s1245_s18, 2 }
   0x8   : > { %p202_p5 = scmp.lt.s32.totalorder (!%p163_p3), %s956_s13, 1  ;;  %p204_p6 = scmp.lt.s32.totalorder (!%p163_p3), %s952_s12, 1 }
   0x9   : > { %s1247_s18 = smov (%p28_p4, %s1245_s18), 0  ;;  %166 = sbr.rel (%p163_p3) target bundleno = 430 (0x1ae), region = 28 }
   0xa   : > { %s971_s8 = smov (!%p163_p3), 112   ;;  %s972_s9 = smov (!%p163_p3), 28  }
   0xb   : > { %s973_s21 = smov (!%p163_p3), 56   ;;  %s975_s6 = smov (!%p163_p3), 12  }
   0xc   : > { %s976_s11 = smov (!%p163_p3), 40  }
   0xe   : > { %v911_v0 = vld [vmem:[%s1233_s1 + $0x38] sm:$0xff]   ;;  %v970_v1 = vmov 0   ;;  %s1249_s13 = smov (!%p202_p5, %s956_s13), 1  ;;  %v912_v2 = vld [vmem:[%s1233_s1 + $0x30] sm:$0xff]   ;;  %v913_v3 = vld [vmem:[%s1233_s1 + $0x28] sm:$0xff]   ;;  %vm234_vm0 = vcmask 224256  }
   0xf   : > { %534 = vmatprep.subr.bf16.mxu0 %v970_v1  ;;  %836 = vmatprep.subr.bf16.mxu1 %v970_v1  ;;  %s1041_s23 = scalar_select %p204_p6, %s952_s12, 1  ;;  %v914_v6 = vld [vmem:[%s1233_s1 + $0x20] sm:$0xff]   ;;  %v915_v9 = vld [vmem:[%s1233_s1 + $0x18] sm:$0xff]   ;;  %v916_v13 = vld [vmem:[%s1233_s1 + $0x10] sm:$0xff]   ;;  %vm530_vm1 = vcmask 1041408   ;;  %vm260_vm2 = vcmask 453856  }
  0x10   : > { %535 = vmatpush1.bf16.msra.mxu0 %v911_v0  ;;  %849 = vmatpush1.bf16.msra.mxu1 %v911_v0  ;;  %s863_s24 = smul.u32 28, %s1249_s13  ;;  %v917_v19 = vld [vmem:[%s1233_s1 + $0x8] sm:$0xff]   ;;  %v918_v22 = vld [vmem:[%s1233_s1] sm:$0xff]   ;;  %v920_v29 = vld [vmem:[%s1233_s1 + $0x58] sm:$0xff]   ;;  %vm285_vm3 = vcmask 683456   ;;  %vm344_vm4 = vcmask 1044352  }
  0x11   : > { %536 = vmatprep.subr.bf16.mxu0 %v970_v1  ;;  %837 = vmatprep.subr.bf16.mxu1 %v970_v1  ;;  %s862_s25 = smul.u32 14, %s1041_s23  ;;  %v919_v23 = vld [vmem:[%s1233_s1 + $0x60] ss:$0 sps:$4 sm:$0x33]   ;;  %v921_v32 = vld [vmem:[%s1233_s1 + $0x50] sm:$0xff]   ;;  %v922_v35 = vld [vmem:[%s1233_s1 + $0x48] sm:$0xff]  }
  0x12   : > { %v532_v26 = vsel %vm530_vm1, %v919_v23, 0  ;;  %v923_v38 = vld [vmem:[%s1233_s1 + $0x40] sm:$0xff]   ;;  %vm345_vm5 = vcmask 97284   ;;  %vm335_vm6 = vcmask 916480   ;;  %vm310_vm7 = vcmask 913056  }
  0x13   : > { %s208_s28 = sadd.s32 %s863_s24, %s862_s25  ;;  %s974_s25 = smov 84   ;;  %vm1163_vm8 = vmor %vm345_vm5, %vm344_vm4  ;;  %vm371_vm9 = vcmask 322656   ;;  %vm396_vm10 = vcmask 552256   ;;  %vm523_vm11 = vcmask 556032   ;;  %vm639_vm12 = vcmask 60416  }
  0x14   : > { %537 = vmatpush1.bf16.msra.mxu0 %v912_v2  ;;  %850 = vmatpush1.bf16.msra.mxu1 %v912_v2  ;;  %s789_s29 = sshll.u32 %s208_s28, 2  ;;  %vm583_vm13 = vcmask 64512   ;;  %vm619_vm14 = vcmask 1040384   ;;  %vm621_vm15 = vcmask 58368  }
  0x15   : > { %538 = vmatprep.subr.bf16.mxu0 %v970_v1  ;;  %838 = vmatprep.subr.bf16.mxu1 %v970_v1  ;;  %s1055_s5 = scalar_lea.vmem %s1232_s0, %s789_s29 }
  0x16   : > { %v315_v4 = vld [vmem:[%s1055_s5 + $0x8] sm:$0xf]  ;;  %v795_v5 = vld [vmem:[%s1055_s5 + $0x1c] sm:$0xf]  ;;  %v316_v7 = vld [vmem:[%s1055_s5 + $0xc] sm:$0xf] }
  0x17   : > { %323 = vrot.lane.b32.xlu1 %v315_v4, %s971_s8  ;;  %248 = vrot.lane.b32.xlu0 %v795_v5, %s972_s9  ;;  %v796_v8 = vld [vmem:[%s1055_s5 + $0x20] sm:$0xf]  ;;  %v266_v10 = vld [vmem:[%s1055_s5 + $0x8] sm:$0xf] }
  0x18   : > { %539 = vmatpush1.bf16.msra.mxu0 %v913_v3  ;;  %851 = vmatpush1.bf16.msra.mxu1 %v913_v3  ;;  %v265_v11 = vld [vmem:[%s1055_s5 + $0x4] sm:$0xf]  ;;  %v230_v12 = vld [vmem:[%s1055_s5] sm:$0xf]  ;;  %v233_v15 = vld [vmem:[%s1055_s5 + $0xc] sm:$0xf] }
  0x19   : > { %540 = vmatprep.subr.bf16.mxu0 %v970_v1  ;;  %839 = vmatprep.subr.bf16.mxu1 %v970_v1  ;;  %235 = vst.msk [vmem:[#allocation2] sm:$0xf] %vm234_vm0, %v230_v12  ;;  %v231_v14 = vld [vmem:[%s1055_s5 + $0x4] sm:$0xf]  ;;  %v799_v17 = vld [vmem:[%s1055_s5 + $0x20] sm:$0xf] }
  0x1a   : > { %v800_v16 = vld [vmem:[%s1055_s5 + $0x24] sm:$0xf]  ;;  %236 = vst.msk [vmem:[#allocation2 + $0x8] sm:$0xf] %vm234_vm0, %v231_v14  ;;  %238 = vst.msk [vmem:[#allocation2 + $0x18] sm:$0xf] %vm234_vm0, %v233_v15 }
  0x1b   : > { %325 = vrot.lane.b32.xlu1 %v316_v7, %s971_s8  ;;  %250 = vrot.lane.b32.xlu0 %v796_v8, %s972_s9  ;;  %v232_v18 = vld [vmem:[%s1055_s5 + $0x8] sm:$0xf]  ;;  %v797_v21 = vld [vmem:[%s1055_s5 + $0x24] sm:$0xf] }
  0x1c   : > { %541 = vmatpush1.bf16.msra.mxu0 %v914_v6  ;;  %852 = vmatpush1.bf16.msra.mxu1 %v914_v6  ;;  %237 = vst.msk [vmem:[#allocation2 + $0x10] sm:$0xf] %vm234_vm0, %v232_v18  ;;  %v798_v20 = vld [vmem:[%s1055_s5 + $0x28] sm:$0xf]  ;;  %v318_v24 = vld [vmem:[%s1055_s5 + $0x14] sm:$0xf] }
  0x1d   : > { %542 = vmatprep.subr.bf16.mxu0 %v970_v1  ;;  %840 = vmatprep.subr.bf16.mxu1 %v970_v1  ;;  %v317_v25 = vld [vmem:[%s1055_s5 + $0x10] sm:$0xf]  ;;  %v804_v27 = vld [vmem:[%s1055_s5 + $0x28] sm:$0xf]  ;;  %v803_v28 = vld [vmem:[%s1055_s5 + $0x24] sm:$0xf] }
  0x1e   : > { %v268_v30 = vld [vmem:[%s1055_s5 + $0x10] sm:$0xf]  ;;  %v267_v31 = vld [vmem:[%s1055_s5 + $0xc] sm:$0xf]  ;;  %v801_v37 = vld [vmem:[%s1055_s5 + $0x28] sm:$0xf] }
  0x1f   : > { %275 = vrot.lane.b32.xlu1 %v266_v10, %s973_s21  ;;  %273 = vrot.lane.b32.xlu0 %v265_v11, %s973_s21  ;;  %v377_v33 = vld [vmem:[%s1055_s5 + $0x10] sm:$0xf]  ;;  %v376_v34 = vld [vmem:[%s1055_s5 + $0xc] sm:$0xf] }
  0x20   : > { %543 = vmatpush1.bf16.msra.mxu0 %v915_v9  ;;  %853 = vmatpush1.bf16.msra.mxu1 %v915_v9  ;;  %v802_v36 = vld [vmem:[%s1055_s5 + $0x2c] sm:$0xf]  ;;  %v806_v39 = vld [vmem:[%s1055_s5 + $0x30] sm:$0xf]  ;;  %v379_v41 = vld [vmem:[%s1055_s5 + $0x18] sm:$0xf] }
  0x21   : > { %544 = vmatprep.subr.bf16.mxu0 %v970_v1  ;;  %841 = vmatprep.subr.bf16.mxu1 %v970_v1  ;;  %v805_v40 = vld [vmem:[%s1055_s5 + $0x2c] sm:$0xf]  ;;  %v378_v42 = vld [vmem:[%s1055_s5 + $0x14] sm:$0xf]  ;;  %s790_s5 = sshll.u32 %s952_s12, 2  ;;  %s793_s12 = sshll.u32 %s1249_s13, 1 }
  0x22   : > { %p214_p7 = scmp.lt.s32.totalorder %s790_s5, 7  ;;  %s226_s28 = sadd.s32 %s793_s12, %s1041_s23 }
  0x23   : > { %300 = vrot.lane.b32.xlu1 %v800_v16, %s974_s25  ;;  %298 = vrot.lane.b32.xlu0 %v799_v17, %s974_s25  ;;  %s794_s29 = sshll.u32 %s226_s28, 1 }
  0x24   : > { %545 = vmatpush1.bf16.msra.mxu0 %v916_v13  ;;  %854 = vmatpush1.bf16.msra.mxu1 %v916_v13  ;;  %s1251_s5 = smov (!%p214_p7, %s790_s5), 7 }
  0x25   : > { %546 = vmatprep.subr.bf16.mxu0 %v970_v1  ;;  %842 = vmatprep.subr.bf16.mxu1 %v970_v1 }
  0x27   : > { %254 = vrot.lane.b32.xlu1 %v798_v20, %s972_s9  ;;  %252 = vrot.lane.b32.xlu0 %v797_v21, %s972_s9 }
  0x28   : > { %547 = vmatpush1.bf16.msra.mxu0 %v917_v19  ;;  %855 = vmatpush1.bf16.msra.mxu1 %v917_v19 }
  0x29   : > { %548 = vmatprep.subr.bf16.mxu0 %v970_v1  ;;  %843 = vmatprep.subr.bf16.mxu1 %v970_v1 }
  0x2b   : > { %329 = vrot.lane.b32.xlu1 %v318_v24, %s971_s8  ;;  %327 = vrot.lane.b32.xlu0 %v317_v25, %s971_s8 }
  0x2c   : > { %549 = vmatpush1.bf16.msra.mxu0 %v918_v22  ;;  %856 = vmatpush1.bf16.msra.mxu1 %v918_v22 }
  0x2d   : > { %556 = vmatprep.subr.bf16.mxu0 %v970_v1  ;;  %844 = vmatprep.subr.bf16.mxu1 %v970_v1 }
  0x2f   : > { %361 = vrot.lane.b32.xlu1 %v804_v27, %s975_s6  ;;  %359 = vrot.lane.b32.xlu0 %v803_v28, %s975_s6 }
  0x30   : > { %557 = vmatpush2.bf16.msra.mxu0 %v532_v26  ;;  %857 = vmatpush2.bf16.msra.mxu1 %v532_v26 }
  0x31   : > { %558 = vmatprep.subr.bf16.mxu0 %v970_v1  ;;  %845 = vmatprep.subr.bf16.mxu1 %v970_v1 }
  0x33   : > { %279 = vrot.lane.b32.xlu1 %v268_v30, %s973_s21  ;;  %277 = vrot.lane.b32.xlu0 %v267_v31, %s973_s21  ;;  %s791_s21 = sshll.u32 %s1249_s13, 3 }
  0x34   : > { %559 = vmatpush2.bf16.msra.mxu0 %v920_v29  ;;  %858 = vmatpush2.bf16.msra.mxu1 %v920_v29  ;;  %s217_s22 = sadd.s32 %s791_s21, %s1251_s5 }
  0x35   : > { %560 = vmatprep.subr.bf16.mxu0 %v970_v1  ;;  %846 = vmatprep.subr.bf16.mxu1 %v970_v1  ;;  %s792_s24 = sshll.u32 %s217_s22, 2 }
  0x36   : > { %s219_s27 = scalar_lea.vmem %s1234_s2, %s792_s24 }
  0x37   : > { %386 = vrot.lane.b32.xlu1 %v377_v33, %s976_s11  ;;  %384 = vrot.lane.b32.xlu0 %v376_v34, %s976_s11 }
  0x38   : > { %561 = vmatpush2.bf16.msra.mxu0 %v921_v32  ;;  %859 = vmatpush2.bf16.msra.mxu1 %v921_v32 }
  0x39   : > { %562 = vmatprep.subr.bf16.mxu0 %v970_v1  ;;  %847 = vmatprep.subr.bf16.mxu1 %v970_v1 }
  0x3b   : > { %304 = vrot.lane.b32.xlu1 %v802_v36, %s974_s25  ;;  %302 = vrot.lane.b32.xlu0 %v801_v37, %s974_s25 }
  0x3c   : > { %563 = vmatpush2.bf16.msra.mxu0 %v922_v35  ;;  %860 = vmatpush2.bf16.msra.mxu1 %v922_v35 }
  0x3d   : > { %564 = vmatprep.subr.bf16.mxu0 %v970_v1  ;;  %848 = vmatprep.subr.bf16.mxu1 %v970_v1 }
  0x3f   : > { %365 = vrot.lane.b32.xlu1 %v806_v39, %s975_s6  ;;  %363 = vrot.lane.b32.xlu0 %v805_v40, %s975_s6  ;;  %s228_s6 = scalar_lea.vmem %s1235_s3, %s794_s29 }
  0x40   : > { %565 = vmatpush2.bf16.msra.mxu0 %v923_v38  ;;  %861 = vmatpush2.bf16.msra.mxu1 %v923_v38 }
  0x43   : > { %390 = vrot.lane.b32.xlu1 %v379_v41, %s976_s11  ;;  %388 = vrot.lane.b32.xlu0 %v378_v42, %s976_s11 }
  0x89   : > { %v324_v43 = vpop.permute.xlu1 %323  ;;  %v249_v44 = vpop.permute.xlu0 %248 }
  0x8a   : > { %261 = vst.msk [vmem:[#allocation2] sm:$0xf] %vm260_vm2, %v249_v44  ;;  %v331_v49 = vrot.slane %v324_v43, 4 }
  0x8c   : > { %v336_v54 = vsel %vm335_vm6, %v331_v49, %v324_v43 }
  0x8d   : > { %v326_v45 = vpop.permute.xlu1 %325  ;;  %v251_v46 = vpop.permute.xlu0 %250 }
  0x8e   : > { %262 = vst.msk [vmem:[#allocation2 + $0x8] sm:$0xf] %vm260_vm2, %v251_v46  ;;  %v332_v50 = vrot.slane %v326_v45, 4 }
  0x90   : > { %v337_v55 = vsel %vm335_vm6, %v332_v50, %v326_v45 }
  0x91   : > { %v276_v47 = vpop.permute.xlu1 %275  ;;  %v274_v48 = vpop.permute.xlu0 %273 }
  0x92   : > { %287 = vst.msk [vmem:[#allocation2 + $0x8] sm:$0xf] %vm285_vm3, %v276_v47  ;;  %286 = vst.msk [vmem:[#allocation2] sm:$0xf] %vm285_vm3, %v274_v48 }
  0x95   : > { %v301_v52 = vpop.permute.xlu1 %300  ;;  %v299_v53 = vpop.permute.xlu0 %298 }
  0x96   : > { %312 = vst.msk [vmem:[#allocation2 + $0x8] sm:$0xf] %vm310_vm7, %v301_v52  ;;  %311 = vst.msk [vmem:[#allocation2] sm:$0xf] %vm310_vm7, %v299_v53 }
  0x97   : > { %348 = vst.msk [vmem:[#allocation2 + $0x8] sm:$0xff] %vm1163_vm8, %v337_v55  ;;  %347 = vst.msk [vmem:[#allocation2] sm:$0xff] %vm1163_vm8, %v336_v54 }
  0x99   : > { %v255_v56 = vpop.permute.xlu1 %254  ;;  %v253_v57 = vpop.permute.xlu0 %252 }
  0x9a   : > { %264 = vst.msk [vmem:[#allocation2 + $0x18] sm:$0xf] %vm260_vm2, %v255_v56  ;;  %263 = vst.msk [vmem:[#allocation2 + $0x10] sm:$0xf] %vm260_vm2, %v253_v57 }
  0x9d   : > { %v330_v58 = vpop.permute.xlu1 %329  ;;  %v328_v59 = vpop.permute.xlu0 %327 }
  0x9e   : > { %v334_v2 = vrot.slane %v330_v58, 4  ;;  %v333_v3 = vrot.slane %v328_v59, 4  ;;  %v924_v10 = vld [vmem:[#allocation2] ss:$8 sps:$4 sm:$0xff]  }
  0xa0   : > { %v339_v6 = vsel %vm335_vm6, %v334_v2, %v330_v58  ;;  %v338_v7 = vsel %vm335_vm6, %v333_v3, %v328_v59 }
  0xa1   : > { %v362_v60 = vpop.permute.xlu1 %361  ;;  %v360_v61 = vpop.permute.xlu0 %359 }
  0xa2   : > { %373 = vst.msk [vmem:[#allocation2 + $0xc] sm:$0xf] %vm371_vm9, %v362_v60  ;;  %372 = vst.msk [vmem:[#allocation2 + $0x4] sm:$0xf] %vm371_vm9, %v360_v61 }
  0xa5   : > { %v280_v62 = vpop.permute.xlu1 %279  ;;  %v278_v63 = vpop.permute.xlu0 %277 }
  0xa6   : > { %289 = vst.msk [vmem:[#allocation2 + $0x18] sm:$0xf] %vm285_vm3, %v280_v62  ;;  %288 = vst.msk [vmem:[#allocation2 + $0x10] sm:$0xf] %vm285_vm3, %v278_v63 }
  0xa9   : > { %v387_v0 = vpop.permute.xlu1 %386  ;;  %v385_v1 = vpop.permute.xlu0 %384 }
  0xaa   : > { %398 = vst.msk [vmem:[#allocation2 + $0xc] sm:$0xf] %vm396_vm10, %v387_v0  ;;  %397 = vst.msk [vmem:[#allocation2 + $0x4] sm:$0xf] %vm396_vm10, %v385_v1 }
  0xad   : > { %v305_v4 = vpop.permute.xlu1 %304  ;;  %v303_v5 = vpop.permute.xlu0 %302 }
  0xae   : > { %314 = vst.msk [vmem:[#allocation2 + $0x18] sm:$0xf] %vm310_vm7, %v305_v4  ;;  %313 = vst.msk [vmem:[#allocation2 + $0x10] sm:$0xf] %vm310_vm7, %v303_v5 }
  0xaf   : > { %350 = vst.msk [vmem:[#allocation2 + $0x18] sm:$0xff] %vm1163_vm8, %v339_v6  ;;  %349 = vst.msk [vmem:[#allocation2 + $0x10] sm:$0xff] %vm1163_vm8, %v338_v7 }
  0xb1   : > { %v366_v8 = vpop.permute.xlu1 %365  ;;  %v364_v9 = vpop.permute.xlu0 %363  ;;  %v926_v11 = vld [vmem:[#allocation2 + $0x4] ss:$8 sps:$4 sm:$0xff]  }
  0xb2   : > { %375 = vst.msk [vmem:[#allocation2 + $0x1c] sm:$0xf] %vm371_vm9, %v366_v8  ;;  %374 = vst.msk [vmem:[#allocation2 + $0x14] sm:$0xf] %vm371_vm9, %v364_v9  ;;  %824 = vmatprep.mubr.msk.bf16.mxu0 %vm523_vm11, %v926_v11 }
  0xb3   : > { %567 = vmatmul.mubr.bf16.vlgmr.msra.gmra.mxu0 %v924_v10 }
  0xb5   : > { %v391_v12 = vpop.permute.xlu1 %390  ;;  %v389_v13 = vpop.permute.xlu0 %388 }
  0xb6   : > { %400 = vst.msk [vmem:[#allocation2 + $0x1c] sm:$0xf] %vm396_vm10, %v391_v12  ;;  %399 = vst.msk [vmem:[#allocation2 + $0x14] sm:$0xf] %vm396_vm10, %v389_v13  ;;  %v927_v14 = vld [vmem:[#allocation2 + $0x10] ss:$8 sps:$4 sm:$0xff]  }
  0xbd   : > { %v929_v15 = vld [vmem:[#allocation2 + $0x14] ss:$8 sps:$4 sm:$0xff]  }
  0xbe   : > { %825 = vmatprep.mubr.msk.bf16.mxu1 %vm523_vm11, %v929_v15 }
  0xbf   : > { %575 = vmatmul.mubr.bf16.vlgmr.msra.gmra.mxu1 %v927_v14 }
 0x173   : > { %v568_v16 = vpop.f32.mrf.mxu0 }
 0x174   : > { %v832_v17 = vpack.c.bf16 %v568_v16, %v568_v16  ;;  %v584_v24 = vsel %vm583_vm13, %v568_v16, 0.0 }
 0x175   : > { %v570_v18 = vpop.f32.mrf.mxu0 }
 0x176   : > { %640 = vst.msk [vmem:[%s219_s27] sm:$0xf] %vm639_vm12, %v832_v17 }
 0x177   : > { %v571_v19 = vpop.f32.mrf.mxu0 }
 0x178   : > { %v833_v20 = vpack.c.bf16 %v571_v19, %v571_v19  ;;  %v585_v22 = vsel %vm583_vm13, %v571_v19, 0.0 }
 0x179   : > { %v573_v21 = vpop.f32.mrf.mxu0  ;;  %v586_v27 = vadd.f32 %v585_v22, %v584_v24 }
 0x17a   : > { %641 = vst.msk [vmem:[%s219_s27 + $0x4] sm:$0xf] %vm639_vm12, %v833_v20 }
 0x17f   : > { %v576_v23 = vpop.f32.mrf.mxu1 }
 0x180   : > { %v587_v25 = vsel %vm583_vm13, %v576_v23, 0.0  ;;  %v834_v26 = vpack.c.bf16 %v576_v23, %v576_v23 }
 0x181   : > { %v578_v28 = vpop.f32.mrf.mxu1  ;;  %v588_v29 = vadd.f32 %v587_v25, %v586_v27 }
 0x182   : > { %642 = vst.msk [vmem:[%s219_s27 + $0x8] sm:$0xf] %vm639_vm12, %v834_v26 }
 0x183   : > { %v579_v30 = vpop.f32.mrf.mxu1 }
 0x184   : > { %v589_v31 = vsel %vm583_vm13, %v579_v30, 0.0  ;;  %v835_v32 = vpack.c.bf16 %v579_v30, %v579_v30 }
 0x185   : > { %v590_v33 = vadd.f32 %v589_v31, %v588_v29  ;;  %v581_v34 = vpop.f32.mrf.mxu1 }
 0x186   : > { %643 = vst.msk [vmem:[%s219_s27 + $0xc] sm:$0xf] %vm639_vm12, %v835_v32 }
 0x187   : > { %v591_v35 = vrot.slane %v590_v33, 4 }
 0x189   : > { %v592_v36 = vadd.f32 %v591_v35, %v590_v33 }
 0x18b   : > { %v593_v37 = vrot.slane %v592_v36, 2 }
 0x18d   : > { %v594_v38 = vadd.f32 %v593_v37, %v592_v36 }
 0x18f   : > { %v595_v39 = vrot.slane %v594_v38, 1 }
 0x191   : > { %v596_v40 = vadd.f32 %v595_v39, %v594_v38 }
 0x193   : > { %v597_v41 = vmul.f32 0.03125, %v596_v40 }
 0x195   : > { %v598_v42 = vsub.f32 %v568_v16, %v597_v41  ;;  %v599_v43 = vsub.f32 %v571_v19, %v597_v41  ;;  %v600_v44 = vsub.f32 %v576_v23, %v597_v41  ;;  %v601_v45 = vsub.f32 %v579_v30, %v597_v41 }
 0x197   : > { %v602_v46 = vmul.f32 %v598_v42, %v598_v42  ;;  %v603_v47 = vmul.f32 %v599_v43, %v599_v43  ;;  %v604_v48 = vmul.f32 %v600_v44, %v600_v44  ;;  %v605_v49 = vmul.f32 %v601_v45, %v601_v45 }
 0x199   : > { %v606_v50 = vsel %vm583_vm13, %v602_v46, 0.0  ;;  %v607_v51 = vsel %vm583_vm13, %v603_v47, 0.0  ;;  %v609_v53 = vsel %vm583_vm13, %v604_v48, 0.0  ;;  %v611_v55 = vsel %vm583_vm13, %v605_v49, 0.0 }
 0x19a   : > { %v608_v52 = vadd.f32 %v607_v51, %v606_v50 }
 0x19c   : > { %v610_v54 = vadd.f32 %v609_v53, %v608_v52 }
 0x19e   : > { %v612_v56 = vadd.f32 %v611_v55, %v610_v54 }
 0x1a0   : > { %v613_v57 = vrot.slane %v612_v56, 4 }
 0x1a2   : > { %v614_v58 = vadd.f32 %v613_v57, %v612_v56 }
 0x1a4   : > { %v615_v59 = vrot.slane %v614_v58, 2 }
 0x1a6   : > { %v616_v60 = vadd.f32 %v615_v59, %v614_v58 }
 0x1a8   : > { %v617_v61 = vrot.slane %v616_v60, 1 }
 0x1aa   : > { %v618_v62 = vadd.f32 %v617_v61, %v616_v60 }
 0x1ac   : > { %v620_v63 = vsel %vm619_vm14, %v596_v40, %v618_v62 }
 0x1ad   : > { %622 = vst.msk [vmem:[%s228_s6] sm:$0x3] %vm621_vm15, %v620_v63 }
 0x1ae PF: > { %s14_s16 = sadd.s32 1, %s968_s16   ;;  %s1238_s12 = smov %s960_s14 }
 0x1af   : > { %p11_p8 = scmp.ge.s32.totalorder %s14_s16, 6   ;;  %s1239_s13 = smov %s964_s15 }
 0x1b0   : > { %s1240_s14 = smov %s1243_s17  ;;  %s1241_s15 = smov %s1247_s18 }
 0x1b1   :  { %13 = sbr.rel (!%p11_p8) target bundleno = 3 (0x3), region = 71 }

// kernel: init_unit_large.3
= control target key start
LH: loop header
LB: loop body
LE: loop exit
PB: predicated region body
PF: predicated region fallthrough
CT: control target
= control target key end

     0   :  { %s597_s12 = smov 0   ;;  %s795_s0 = inlined_call_operand.vmem [shape: bf16[2,4,4,32], index: 0, kind: input, shape index: {}]   ;;  %s796_s1 = inlined_call_operand.vmem [shape: f32[1,32], index: 1, kind: input, shape index: {}]   ;;  %s797_s2 = inlined_call_operand.vmem [shape: f32[1,32], index: 2, kind: input, shape index: {}]   ;;  %s798_s3 = inlined_call_operand.vmem [shape: f32[2,4,32], index: 3, kind: output, shape index: {}]  }
   0x1 LB: > { %s532_s13 = sadd.s32 4294967295, %s573_s12   ;;  %p536_p0 = scmp.ge.s32.totalorder %s573_s12, 1  ;;  %s573_s12 = sphi %s597_s12, %s13_s12  }
   0x2   : > { %p137_p1 = scmp.lt.s32.totalorder %s573_s12, 3 }
   0x4   : > { %p138_p2 = pnand %p536_p0, %p137_p1 }
   0x5   : > { %p160_p3 = scmp.lt.s32.totalorder (!%p138_p2), %s532_s13, 1  ;;  %s575_s22 = smov (!%p138_p2), 32  }
   0x6   : > { %141 = sbr.rel (%p138_p2) target bundleno = 396 (0x18c), region = 32  ;;  %s576_s23 = smov (!%p138_p2), 104  }
   0xb   : > { %v608_v0 = vld [vmem:[%s796_s1] ss:$0 sm:$0xff]  ;;  %v271_v2 = vlaneseq  ;;  %s800_s13 = smov (!%p160_p3, %s532_s13), 1  ;;  %vm294_vm0 = vcmask 1041409   ;;  %vm296_vm1 = vcmask 1042434   ;;  %vm298_vm2 = vcmask 1043459  }
   0xc   : > { %v613_v1 = vld [vmem:[%s797_s2] ss:$0 sm:$0xff]  ;;  %v621_v4 = vrot.slane %v608_v0, 7  ;;  %v239_v6 = vrot.slane %v608_v0, 6  ;;  %s556_s18 = sshll.u32 %s800_s13, 3  ;;  %v255_v8 = vrot.slane %v608_v0, 5 }
   0xd   : > { %v618_v3 = vshrl.u32 %v271_v2, 7  ;;  %v624_v5 = vrot.slane %v613_v1, 7  ;;  %v245_v7 = vrot.slane %v613_v1, 6  ;;  %v261_v9 = vrot.slane %v613_v1, 5  ;;  %s164_s21 = scalar_lea.vmem %s795_s0, %s556_s18  ;;  %s539_s24 = sshll.u32 %s800_s13, 2 }
   0xe   : > { %v632_v10 = vrot.slane %v608_v0, 1  ;;  %v185_v12 = vrot.slane %v608_v0, 2  ;;  %v640_v13 = vrot.slane %v613_v1, 1  ;;  %v201_v14 = vrot.slane %v613_v1, 2  ;;  %v643_v15 = vld [vmem:[%s164_s21] sm:$0x2]  ;;  %s168_s27 = scalar_lea.vmem %s798_s3, %s539_s24 }
   0xf   : > { %v319_v11 = vsub.s32 3, %v618_v3  ;;  %v645_v16 = vld [vmem:[%s164_s21 + $0x2] sm:$0x2]  ;;  %v647_v17 = vld [vmem:[%s164_s21 + $0x4] sm:$0x2]  ;;  %v235_v19 = vunpack.c.l.bf16 %v643_v15  ;;  %v280_v29 = vsub.s32 1, %v618_v3 }
  0x10   : > { %v649_v18 = vld [vmem:[%s164_s21 + $0x6] sm:$0x2]  ;;  %v236_v20 = vunpack.c.l.bf16 %v645_v16  ;;  %v237_v21 = vunpack.c.l.bf16 %v647_v17  ;;  %v654_v22 = vld [vmem:[%s164_s21] sm:$0x1]  ;;  %v656_v23 = vld [vmem:[%s164_s21 + $0x2] sm:$0x1] }
  0x11   : > { %v238_v24 = vunpack.c.l.bf16 %v649_v18  ;;  %v659_v25 = vld [vmem:[%s164_s21 + $0x4] sm:$0x1]  ;;  %v661_v26 = vld [vmem:[%s164_s21 + $0x6] sm:$0x1]  ;;  %v175_v27 = vunpack.c.l.bf16 %v654_v22  ;;  %v176_v28 = vunpack.c.l.bf16 %v656_v23  ;;  %v257_v30 = vmul.f32 %v255_v8, %v235_v19 }
  0x12   : > { %v258_v31 = vmul.f32 %v239_v6, %v236_v20  ;;  %v259_v32 = vmul.f32 %v237_v21, %v621_v4  ;;  %v177_v33 = vunpack.c.l.bf16 %v659_v25  ;;  %v178_v35 = vunpack.c.l.bf16 %v661_v26 }
  0x13   : > { %v260_v34 = vmul.f32 %v608_v0, %v238_v24  ;;  %v217_v36 = vmul.f32 %v621_v4, %v175_v27  ;;  %v218_v37 = vmul.f32 %v608_v0, %v176_v28  ;;  %v686_v38 = vadd.f32 %v261_v9, %v257_v30 }
  0x14   : > { %v690_v39 = vadd.f32 %v258_v31, %v245_v7  ;;  %v693_v40 = vadd.f32 %v259_v32, %v624_v5  ;;  %v219_v41 = vmul.f32 %v632_v10, %v177_v33  ;;  %v220_v43 = vmul.f32 %v185_v12, %v178_v35 }
  0x15   : > { %v266_v42 = vadd.f32 %v613_v1, %v260_v34  ;;  %v704_v44 = vadd.f32 %v624_v5, %v217_v36  ;;  %v707_v45 = vadd.f32 %v613_v1, %v218_v37  ;;  %v267_v46 = vmax.f32 %v686_v38, 0.0 }
  0x16   : > { %v268_v47 = vmax.f32 %v690_v39, 0.0  ;;  %v269_v48 = vmax.f32 %v693_v40, 0.0  ;;  %v713_v49 = vadd.f32 %v219_v41, %v640_v13  ;;  %v717_v51 = vadd.f32 %v220_v43, %v201_v14 }
  0x17   : > { %v270_v50 = vmax.f32 %v266_v42, 0.0  ;;  %v227_v52 = vmax.f32 %v704_v44, 0.0  ;;  %v228_v53 = vmax.f32 %v707_v45, 0.0  ;;  %v320_v54 = vrot.slane %v267_v46, %v319_v11 }
  0x18   : > { %v324_v55 = vrot.slane %v268_v47, %v319_v11  ;;  %v328_v56 = vrot.slane %v269_v48, %v319_v11  ;;  %v229_v57 = vmax.f32 %v713_v49, 0.0  ;;  %v230_v59 = vmax.f32 %v717_v51, 0.0 }
  0x19   : > { %v332_v58 = vrot.slane %v270_v50, %v319_v11  ;;  %v281_v60 = vrot.slane %v227_v52, %v280_v29  ;;  %v285_v62 = vrot.slane %v228_v53, %v280_v29  ;;  %vm301_vm3 = vcmask 1047808  }
  0x1a   : > { %v333_v61 = vsel %vm294_vm0, %v324_v55, %v320_v54  ;;  %v289_v63 = vrot.slane %v229_v57, %v280_v29  ;;  %v293_v9 = vrot.slane %v230_v59, %v280_v29  ;;  %v243_v42 = vmul.f32 %v608_v0, %v237_v21 }
  0x1b   : > { %v334_v8 = vsel %vm296_vm1, %v328_v56, %v333_v61  ;;  %v295_v11 = vsel %vm294_vm0, %v285_v62, %v281_v60  ;;  %v241_v43 = vmul.f32 %v239_v6, %v235_v19  ;;  %v242_v51 = vmul.f32 %v236_v20, %v621_v4 }
  0x1c   : > { %v335_v30 = vsel %vm298_vm2, %v332_v58, %v334_v8  ;;  %v297_v31 = vsel %vm296_vm1, %v289_v63, %v295_v11  ;;  %v244_v54 = vmul.f32 %v238_v24, %v632_v10  ;;  %v186_v55 = vrot.slane %v608_v0, 3 }
  0x1d   : > { %337 = vrot.lane.b32.xlu0 %v335_v30, %s575_s22  ;;  %v299_v32 = vsel %vm298_vm2, %v293_v9, %v297_v31  ;;  %v249_v56 = vadd.f32 %v613_v1, %v243_v42  ;;  %v247_v17 = vadd.f32 %v245_v7, %v241_v43  ;;  %v191_v15 = vmul.f32 %v608_v0, %v175_v27 }
  0x1e   : > { %v248_v6 = vadd.f32 %v242_v51, %v624_v5  ;;  %v250_v16 = vadd.f32 %v244_v54, %v640_v13  ;;  %v192_v4 = vmul.f32 %v632_v10, %v176_v28  ;;  %v193_v18 = vmul.f32 %v185_v12, %v177_v33 }
  0x1f   : > { %v194_v7 = vmul.f32 %v186_v55, %v178_v35  ;;  %v202_v19 = vrot.slane %v613_v1, 3  ;;  %v549_v20 = vrot.slane %v270_v50, 9  ;;  %v253_v21 = vmax.f32 %v249_v56, 0.0 }
  0x20   : > { %v272_v5 = vand.u32 127, %v271_v2  ;;  %v548_v22 = vrot.slane %v269_v48, 9  ;;  %v251_v24 = vmax.f32 %v247_v17, 0.0  ;;  %v546_v27 = vrot.slane %v267_v46, 9 }
  0x21   : > { %302 = vrot.lane.b32.xlu0 %v299_v32, %s575_s22  ;;  %v547_v23 = vrot.slane %v268_v47, 9  ;;  %v207_v10 = vadd.f32 %v613_v1, %v191_v15  ;;  %v252_v28 = vmax.f32 %v248_v6, 0.0  ;;  %v254_v25 = vmax.f32 %v250_v16, 0.0 }
  0x22   : > { %v208_v0 = vadd.f32 %v640_v13, %v192_v4  ;;  %v209_v12 = vadd.f32 %v201_v14, %v193_v18  ;;  %v210_v26 = vadd.f32 %v202_v19, %v194_v7  ;;  %v545_v33 = vrot.slane %v230_v59, 9 }
  0x23   : > { %vm273_vm4 = vcmp.ge.s32.totalorder %v272_v5, 8  ;;  %v390_v35 = vmax.f32 %v253_v21, %v548_v22  ;;  %v388_v50 = vmax.f32 %v251_v24, %v546_v27  ;;  %v409_v2 = vsub.s32 2, %v618_v3 }
  0x24   : > { %v542_v46 = vrot.slane %v227_v52, 9  ;;  %v211_v47 = vmax.f32 %v207_v10, 0.0  ;;  %v389_v48 = vmax.f32 %v252_v28, %v547_v23  ;;  %v391_v58 = vmax.f32 %v254_v25, %v549_v20 }
  0x25   : > { %v212_v61 = vmax.f32 %v208_v0, 0.0  ;;  %v213_v62 = vmax.f32 %v209_v12, 0.0  ;;  %v214_v1 = vmax.f32 %v210_v26, 0.0  ;;  %v543_v14 = vrot.slane %v228_v53, 9 }
  0x26   : > { %v544_v59 = vrot.slane %v229_v57, 9  ;;  %v360_v52 = vmax.f32 %v211_v47, %v542_v46  ;;  %vm422_vm5 = vcmask 1040384   ;;  %v459_v16 = vsub.s32 0, %v618_v3 }
  0x27   : > { %vm477_vm6 = vcmask 257024  }
  0x8f   : > { %v338_v34 = vpop.permute.xlu0 %337 }
  0x90   : > { %v339_v36 = vsel %vm301_vm3, %v338_v34, %v335_v30  ;;  %v361_v34 = vmax.f32 %v212_v61, %v543_v14 }
  0x91   : > { %340 = vrot.lane.b32.xlu1 %v339_v36, %s575_s22  ;;  %v362_v36 = vmax.f32 %v213_v62, %v544_v59 }
  0x93   : > { %v303_v37 = vpop.permute.xlu0 %302 }
  0x94   : > { %v304_v38 = vsel %vm301_vm3, %v303_v37, %v299_v32  ;;  %v363_v37 = vmax.f32 %v214_v1, %v545_v33 }
  0x95   : > { %305 = vrot.lane.b32.xlu1 %v304_v38, %s575_s22 }
 0x103   : > { %v341_v39 = vpop.permute.xlu1 %340 }
 0x104   : > { %v342_v29 = vsel %vm301_vm3, %v341_v39, %v335_v30 }
 0x105   : > { %344 = vrot.lane.b32.xlu0 %v342_v29, %s576_s23 }
 0x107   : > { %v306_v40 = vpop.permute.xlu1 %305 }
 0x108   : > { %v307_v41 = vsel %vm301_vm3, %v306_v40, %v299_v32 }
 0x109   : > { %309 = vrot.lane.b32.xlu1 %v307_v41, %s576_s23 }
 0x177   : > { %v345_v60 = vpop.permute.xlu0 %344 }
 0x178   : > { %v347_v13 = vsel %vm273_vm4, %v345_v60, 0.0 }
 0x179   : > { %v393_v63 = vrot.slane %v347_v13, 6  ;;  %v394_v8 = vrot.slane %v347_v13, 7  ;;  %v395_v9 = vrot.slane %v347_v13, 1  ;;  %v402_v44 = vmax.f32 %v390_v35, %v347_v13 }
 0x17b   : > { %v400_v30 = vmax.f32 %v388_v50, %v393_v63  ;;  %v401_v11 = vmax.f32 %v389_v48, %v394_v8  ;;  %v403_v31 = vmax.f32 %v391_v58, %v395_v9  ;;  %v310_v32 = vpop.permute.xlu1 %309  ;;  %v418_v39 = vrot.slane %v402_v44, %v409_v2 }
 0x17c   : > { %v312_v38 = vsel %vm273_vm4, %v310_v32, 0.0  ;;  %v552_v49 = vrot.slane %v402_v44, 10 }
 0x17d   : > { %v410_v45 = vrot.slane %v400_v30, %v409_v2  ;;  %v414_v53 = vrot.slane %v401_v11, %v409_v2  ;;  %v365_v57 = vrot.slane %v312_v38, 1  ;;  %v366_v29 = vrot.slane %v312_v38, 2 }
 0x17e   : > { %v367_v40 = vrot.slane %v312_v38, 3  ;;  %v372_v41 = vmax.f32 %v360_v52, %v312_v38  ;;  %v551_v43 = vrot.slane %v401_v11, 10  ;;  %v553_v51 = vrot.slane %v403_v31, 10 }
 0x17f   : > { %v419_v42 = vsel %vm296_vm1, %v414_v53, %v410_v45  ;;  %v550_v54 = vrot.slane %v400_v30, 10  ;;  %v373_v56 = vmax.f32 %v361_v34, %v365_v57  ;;  %v374_v17 = vmax.f32 %v362_v36, %v366_v29 }
 0x180   : > { %v420_v55 = vsel %vm298_vm2, %v418_v39, %v419_v42  ;;  %v375_v15 = vmax.f32 %v363_v37, %v367_v40 }
 0x181   : > { %v423_v6 = vsel %vm422_vm5, 0.0, %v420_v55  ;;  %v437_v4 = vmax.f32 %v372_v41, %v550_v54  ;;  %v438_v18 = vmax.f32 %v373_v56, %v551_v43  ;;  %v439_v7 = vmax.f32 %v374_v17, %v552_v49 }
 0x182   : > { %v440_v19 = vmax.f32 %v375_v15, %v553_v51  ;;  %v442_v20 = vrot.slane %v423_v6, 1  ;;  %v443_v21 = vrot.slane %v423_v6, 2  ;;  %v444_v5 = vrot.slane %v423_v6, 3 }
 0x183   : > { %v449_v22 = vmax.f32 %v437_v4, %v423_v6 }
 0x184   : > { %v450_v24 = vmax.f32 %v438_v18, %v442_v20  ;;  %v451_v27 = vmax.f32 %v439_v7, %v443_v21  ;;  %v452_v23 = vmax.f32 %v440_v19, %v444_v5 }
 0x185   : > { %v460_v10 = vrot.slane %v449_v22, %v459_v16 }
 0x186   : > { %v464_v28 = vrot.slane %v450_v24, %v459_v16  ;;  %v468_v25 = vrot.slane %v451_v27, %v459_v16  ;;  %v472_v3 = vrot.slane %v452_v23, %v459_v16 }
 0x188   : > { %v473_v0 = vsel %vm294_vm0, %v464_v28, %v460_v10 }
 0x189   : > { %v474_v12 = vsel %vm296_vm1, %v468_v25, %v473_v0 }
 0x18a   : > { %v475_v26 = vsel %vm298_vm2, %v472_v3, %v474_v12 }
 0x18b   : > { %478 = vst.msk [vmem:[%s168_s27] sm:$0xf] %vm477_vm6, %v475_v26 }
 0x18c PF: > { %s13_s12 = sadd.s32 1, %s573_s12  }
 0x18d   : > { %p10_p4 = scmp.ge.s32.totalorder %s13_s12, 4  }
 0x18f   :  { %12 = sbr.rel (!%p10_p4) target bundleno = 1 (0x1), region = 62 }

</bundles_post_ra>
